<compile_context>
chip_gen: v6e
topology: v6e:2x2x1
jax: 0.10.0
libtpu: 0.0.40
codegen_flags: <defaults>
</compile_context>

<pallas_src>
import functools

import jax
import jax.numpy as jnp
import numpy as np
from jax import lax
from jax.experimental import pallas as pl
from jax.experimental.pallas import tpu as pltpu

# ---------------- configuration (matches SplitAttConv2d defaults) -------------
IN_CHANNELS = 8
CHANNELS = 8
KERNEL_SIZE = 3
STRIDE = 1
PADDING = 1
DILATION = 1
GROUPS = 1                       # cardinality
RADIX = 2
REDUCTION_FACTOR = 4
INTER_CHANNELS = max(IN_CHANNELS * RADIX // REDUCTION_FACTOR, 32)  # == 32

G_TOTAL = GROUPS * RADIX                     # conv groups (= groups * radix)
CIN_G = IN_CHANNELS // G_TOTAL               # input channels per conv group
COUT_TOTAL = CHANNELS * RADIX                # conv output channels
COUT_G = COUT_TOTAL // G_TOTAL               # output channels per conv group
CHPC = CHANNELS // GROUPS                    # channels per cardinal group
KK = KERNEL_SIZE * KERNEL_SIZE
KG = KK * CIN_G                              # contraction length per conv group
K_TOTAL = G_TOTAL * KG                       # fused block-diagonal contraction


# ------------------------------- Pallas kernel --------------------------------
def _splat_kernel(p_ref, wc_ref, bc_ref, w1_ref, b1_ref, w2_ref, b2_ref,
                  out_ref, *, bb, hw, true_hw):
    """Split-attention conv for `bb` batch elements, HW in lanes everywhere.

    p_ref  : (K_TOTAL, bb*hw)       bf16 im2col patches, batch-major lanes
    wc_ref : (COUT_TOTAL, K_TOTAL)  bf16 block-diagonal grouped conv weight
    bc_ref : (COUT_TOTAL, 1)        f32 conv bias (column)
    w1_ref : (INTER, CHANNELS)      bf16 fc1;   b1_ref (INTER, 1) f32
    w2_ref : (COUT_TOTAL, INTER)    bf16 fc2, rows permuted radix-major
    b2_ref : (COUT_TOTAL, 1)        f32
    out_ref: (bb, CHANNELS, hw)     f32 NCHW-flattened output
    """
    # ---- fused grouped conv for all bb batch elements: one long-N MXU call ---
    y = jnp.dot(wc_ref[...], p_ref[...],
                preferred_element_type=jnp.float32)            # [COUT, bb*hw] f32
    y = jnp.maximum(y + bc_ref[...], 0.0)                      # bias + ReLU (f32)

    # ---- sum of radix splits (row blocks), masked where HW was lane-padded ---
    gap = y[0:CHANNELS, :]
    for r in range(1, RADIX):
        gap = gap + y[r * CHANNELS:(r + 1) * CHANNELS, :]
    if hw != true_hw:
        col = lax.broadcasted_iota(jnp.int32, gap.shape, 1)
        gap = jnp.where((col % hw) < true_hw, gap, 0.0)

    # ---- per-batch global average pool -> [CHANNELS, bb]  (XLU reduces) ------
    col_idx = lax.broadcasted_iota(jnp.int32, (CHANNELS, bb), 1)
    gap_mat = jnp.zeros((CHANNELS, bb), jnp.float32)
    for i in range(bb):
        s = jnp.sum(gap[:, i * hw:(i + 1) * hw], axis=1, keepdims=True)
        gap_mat = jnp.where(col_idx == i, s, gap_mat)
    gap_mat = gap_mat * (1.0 / true_hw)

    # ---- batched fc1 -> ReLU -> fc2 across the bb pooled columns -------------
    z = jnp.dot(w1_ref[...], gap_mat.astype(jnp.bfloat16),
                preferred_element_type=jnp.float32) + b1_ref[...]   # [INTER, bb]
    z = jnp.maximum(z, 0.0)
    a = jnp.dot(w2_ref[...], z.astype(jnp.bfloat16),
                preferred_element_type=jnp.float32) + b2_ref[...]   # [COUT, bb]

    # ---- rSoftMax over the radix axis (rows radix-major), per batch column ---
    if RADIX > 1:
        a_r = [a[r * CHANNELS:(r + 1) * CHANNELS, :] for r in range(RADIX)]
        mx = a_r[0]
        for r in range(1, RADIX):
            mx = jnp.maximum(mx, a_r[r])
        ex = [jnp.exp(s - mx) for s in a_r]
        den = ex[0]
        for r in range(1, RADIX):
            den = den + ex[r]
        inv_den = pl.reciprocal(den, approx=True)               # EUP slot
        att = [e * inv_den for e in ex]                         # each [CHANNELS, bb]
    else:
        att = [jax.nn.sigmoid(a)]

    # ---- attention-weighted sum of splits; lane-dense per-batch stores -------
    for i in range(bb):
        lo = i * hw
        acc = att[0][:, i:i + 1] * y[0:CHANNELS, lo:lo + hw]
        for r in range(1, RADIX):
            acc = acc + att[r][:, i:i + 1] * y[r * CHANNELS:(r + 1) * CHANNELS,
                                               lo:lo + hw]
        out_ref[i] = acc.astype(out_ref.dtype)


def _pick_block_batch(batch):
    """Batch elements per grid step: fat steps amortize the ~0.35us per-step
    pipeline overhead; prefer an even number (>=2) of grid steps so both v7x
    TensorCores get work, otherwise just take the biggest divisor <= 16."""
    for bb in (16, 8, 4, 2, 1):
        if batch % bb == 0 and (batch // bb) >= 2 and (batch // bb) % 2 == 0:
            return bb
    for bb in (16, 8, 4, 2, 1):
        if batch % bb == 0:
            return bb
    return 1


# --------------------------------- wrapper ------------------------------------
@jax.jit
def split_att_conv2d(x_nchw, wconv, bconv, w1, b1, w2, b2):
    B, _, H, W = x_nchw.shape
    Ho = (H + 2 * PADDING - DILATION * (KERNEL_SIZE - 1) - 1) // STRIDE + 1
    Wo = (W + 2 * PADDING - DILATION * (KERNEL_SIZE - 1) - 1) // STRIDE + 1
    HW = Ho * Wo
    HW_PAD = max(128, ((HW + 127) // 128) * 128)               # lane-dense stores

    # ---- glue: im2col into [K_TOTAL, B*HW_PAD]  (batch-major along lanes) ----
    # TODO(synk): move this in-kernel (see header) to cut input HBM traffic ~9x.
    x_pad = jnp.pad(x_nchw, ((0, 0), (0, 0),
                             (PADDING, PADDING), (PADDING, PADDING)))
    taps = []
    for i in range(KERNEL_SIZE):
        for j in range(KERNEL_SIZE):
            hs, ws = i * DILATION, j * DILATION
            taps.append(x_pad[:, :, hs:hs + (Ho - 1) * STRIDE + 1:STRIDE,
                              ws:ws + (Wo - 1) * STRIDE + 1:STRIDE])
    patches = jnp.stack(taps, axis=1)                        # [B, KK, CIN, Ho, Wo]
    patches = patches.reshape(B, KK, G_TOTAL, CIN_G, Ho, Wo)
    patches = jnp.transpose(patches, (0, 2, 1, 3, 4, 5))     # [B, G, KK, CIN_G, Ho, Wo]
    patches = patches.reshape(B, K_TOTAL, HW)
    if HW_PAD != HW:
        patches = jnp.pad(patches, ((0, 0), (0, 0), (0, HW_PAD - HW)))
    patches = jnp.transpose(patches, (1, 0, 2)).reshape(K_TOTAL, B * HW_PAD)
    patches = patches.astype(jnp.bfloat16)

    # ---- glue: conv weights -> single block-diagonal [COUT_TOTAL, K_TOTAL] ----
    w_bd = jnp.zeros((COUT_TOTAL, K_TOTAL), jnp.float32)
    for g in range(G_TOTAL):
        wg = wconv[g * COUT_G:(g + 1) * COUT_G]              # [COUT_G, CIN_G, KH, KW]
        blk = jnp.transpose(wg, (0, 2, 3, 1)).reshape(COUT_G, KG)
        w_bd = w_bd.at[g * COUT_G:(g + 1) * COUT_G, g * KG:(g + 1) * KG].set(blk)
    w_bd = w_bd.astype(jnp.bfloat16)
    bconv_col = bconv.reshape(COUT_TOTAL, 1).astype(jnp.float32)

    # ---- glue: fc1 as dense block-diagonal [INTER, CHANNELS] ----
    in1_g, out1_g = CHANNELS // GROUPS, INTER_CHANNELS // GROUPS
    w1_d = jnp.zeros((INTER_CHANNELS, CHANNELS), jnp.float32)
    for g in range(GROUPS):
        blk = w1[g * out1_g:(g + 1) * out1_g, :, 0, 0]       # [out1_g, in1_g]
        w1_d = w1_d.at[g * out1_g:(g + 1) * out1_g,
                       g * in1_g:(g + 1) * in1_g].set(blk)
    w1_d = w1_d.astype(jnp.bfloat16)
    b1_col = b1.reshape(INTER_CHANNELS, 1).astype(jnp.float32)

    # ---- glue: fc2 as dense block-diagonal [COUT_TOTAL, INTER] with output
    # rows permuted into the rSoftMax layout (radix-major, then channel) ----
    in2_g, out2_g = INTER_CHANNELS // GROUPS, COUT_TOTAL // GROUPS
    w2_d = jnp.zeros((COUT_TOTAL, INTER_CHANNELS), jnp.float32)
    for g in range(GROUPS):
        blk = w2[g * out2_g:(g + 1) * out2_g, :, 0, 0]       # [out2_g, in2_g]
        w2_d = w2_d.at[g * out2_g:(g + 1) * out2_g,
                       g * in2_g:(g + 1) * in2_g].set(blk)
    perm = []
    for q in range(COUT_TOTAL):
        r, rem = q // CHANNELS, q % CHANNELS
        c, k = rem // CHPC, rem % CHPC
        perm.append(c * RADIX * CHPC + r * CHPC + k)
    perm = jnp.asarray(perm, jnp.int32)
    w2_p = w2_d[perm, :].astype(jnp.bfloat16)
    b2_col = b2.reshape(-1)[perm].reshape(COUT_TOTAL, 1).astype(jnp.float32)

    bb = _pick_block_batch(B)
    grid = (B // bb,)
    kernel = functools.partial(_splat_kernel, bb=bb, hw=HW_PAD, true_hw=HW)

    flops = (2 * COUT_TOTAL * K_TOTAL * B * HW_PAD
             + grid[0] * 2 * (INTER_CHANNELS * CHANNELS
                              + COUT_TOTAL * INTER_CHANNELS) * bb
             + 8 * COUT_TOTAL * B * HW_PAD)
    bytes_accessed = (2 * K_TOTAL * B * HW_PAD                # bf16 patches in
                      + 4 * B * CHANNELS * HW_PAD             # f32 output
                      + grid[0] * (2 * (COUT_TOTAL * K_TOTAL
                                        + INTER_CHANNELS * CHANNELS
                                        + COUT_TOTAL * INTER_CHANNELS)
                                   + 4 * (2 * COUT_TOTAL + INTER_CHANNELS)))

    out_flat = pl.pallas_call(
        kernel,
        out_shape=jax.ShapeDtypeStruct((B, CHANNELS, HW_PAD), jnp.float32),
        grid_spec=pltpu.PrefetchScalarGridSpec(
            num_scalar_prefetch=0,
            grid=grid,
            in_specs=[
                pl.BlockSpec((K_TOTAL, bb * HW_PAD), lambda b: (0, b)),
                pl.BlockSpec((COUT_TOTAL, K_TOTAL), lambda b: (0, 0)),
                pl.BlockSpec((COUT_TOTAL, 1), lambda b: (0, 0)),
                pl.BlockSpec((INTER_CHANNELS, CHANNELS), lambda b: (0, 0)),
                pl.BlockSpec((INTER_CHANNELS, 1), lambda b: (0, 0)),
                pl.BlockSpec((COUT_TOTAL, INTER_CHANNELS), lambda b: (0, 0)),
                pl.BlockSpec((COUT_TOTAL, 1), lambda b: (0, 0)),
            ],
            out_specs=pl.BlockSpec((bb, CHANNELS, HW_PAD), lambda b: (b, 0, 0)),
        ),
        compiler_params=pltpu.CompilerParams(dimension_semantics=("parallel",)),
        cost_estimate=pl.CostEstimate(flops=flops,
                                      transcendentals=B * COUT_TOTAL,
                                      bytes_accessed=bytes_accessed),
    )(patches, w_bd, bconv_col, w1_d, b1_col, w2_p, b2_col)

    # already NCHW-flattened: crop lane padding and split HW back into (Ho, Wo)
    return out_flat[:, :, :HW].reshape(B, CHANNELS, Ho, Wo)


# ---------------------- pure-JAX reference (for checking) ---------------------
def reference_forward(x, wconv, bconv, w1, b1, w2, b2):
    dn = ('NCHW', 'OIHW', 'NCHW')
    y = lax.conv_general_dilated(
        x, wconv, window_strides=(STRIDE, STRIDE),
        padding=((PADDING, PADDING), (PADDING, PADDING)),
        rhs_dilation=(DILATION, DILATION), dimension_numbers=dn,
        feature_group_count=G_TOTAL, precision=lax.Precision.HIGHEST)
    y = jnp.maximum(y + bconv[None, :, None, None], 0.0)
    if RADIX > 1:
        splits = [y[:, r * CHANNELS:(r + 1) * CHANNELS] for r in range(RADIX)]
    else:
        splits = [y]
    gap = splits[0]
    for r in range(1, len(splits)):
        gap = gap + splits[r]
    gap = jnp.mean(gap, axis=(2, 3), keepdims=True)
    z = lax.conv_general_dilated(gap, w1, (1, 1), ((0, 0), (0, 0)),
                                 dimension_numbers=dn, feature_group_count=GROUPS,
                                 precision=lax.Precision.HIGHEST)
    z = jnp.maximum(z + b1[None, :, None, None], 0.0)
    a = lax.conv_general_dilated(z, w2, (1, 1), ((0, 0), (0, 0)),
                                 dimension_numbers=dn, feature_group_count=GROUPS,
                                 precision=lax.Precision.HIGHEST)
    a = a + b2[None, :, None, None]
    B = x.shape[0]
    if RADIX > 1:
        a2 = a.reshape(B, GROUPS, RADIX, -1)
        a2 = jnp.transpose(a2, (0, 2, 1, 3))
        a2 = jax.nn.softmax(a2, axis=1)
        atten = a2.reshape(B, -1)
        attens = [atten[:, r * CHANNELS:(r + 1) * CHANNELS] for r in range(RADIX)]
        out = attens[0][:, :, None, None] * splits[0]
        for r in range(1, RADIX):
            out = out + attens[r][:, :, None, None] * splits[r]
    else:
        atten = jax.nn.sigmoid(a).reshape(B, -1)
        out = atten[:, :, None, None] * y
    return out


# ----------------------------------- main --------------------------------------
if __name__ == "__main__":
    key = jax.random.PRNGKey(0)
    ks = jax.random.split(key, 7)
    B, H, W = 4, 16, 16

    x = jax.random.normal(ks[0], (B, IN_CHANNELS, H, W), jnp.float32)
    wconv = jax.random.normal(ks[1], (COUT_TOTAL, CIN_G, KERNEL_SIZE, KERNEL_SIZE),
                              jnp.float32) * 0.1
    bconv = jax.random.normal(ks[2], (COUT_TOTAL,), jnp.float32) * 0.1
    w1 = jax.random.normal(ks[3], (INTER_CHANNELS, CHANNELS // GROUPS, 1, 1),
                           jnp.float32) * 0.1
    b1 = jax.random.normal(ks[4], (INTER_CHANNELS,), jnp.float32) * 0.1
    w2 = jax.random.normal(ks[5], (COUT_TOTAL, INTER_CHANNELS // GROUPS, 1, 1),
                           jnp.float32) * 0.1
    b2 = jax.random.normal(ks[6], (COUT_TOTAL,), jnp.float32) * 0.1

    out = split_att_conv2d(x, wconv, bconv, w1, b1, w2, b2)
    out = jax.block_until_ready(out)

    ref = reference_forward(x, wconv, bconv, w1, b1, w2, b2)
    assert out.shape == ref.shape == (B, CHANNELS, H, W)
    # kernel matmul inputs are bf16 (equivalent to default one-pass MXU
    # precision) vs HIGHEST-precision reference; tolerance widened accordingly.
    np.testing.assert_allclose(np.asarray(out), np.asarray(ref),
                               rtol=2e-2, atol=2e-2)
    print("KERNEL_OK")
</pallas_src>

<mosaic_0001>
module attributes {stable_mosaic.version = 11 : i64} {
  func.func @_splat_kernel(%arg0: i32, %arg1: memref<72x512xbf16, #tpu.memory_space<vmem>>, %arg2: memref<16x72xbf16, #tpu.memory_space<vmem>>, %arg3: memref<16x1xf32, #tpu.memory_space<vmem>>, %arg4: memref<32x8xbf16, #tpu.memory_space<vmem>>, %arg5: memref<32x1xf32, #tpu.memory_space<vmem>>, %arg6: memref<16x32xbf16, #tpu.memory_space<vmem>>, %arg7: memref<16x1xf32, #tpu.memory_space<vmem>>, %arg8: memref<2x8x256xf32, #tpu.memory_space<vmem>>) attributes {dimension_semantics = [#tpu.dimension_semantics<parallel>], iteration_bounds = array<i64: 2>, scalar_prefetch = 0 : i64, scratch_operands = 0 : i64, tpu.core_type = #tpu.core_type<tc>, window_params = [{transform_indices = @transform_0, window_bounds = array<i64: 72, 512>}, {pipeline_mode = #tpu.pipeline_mode<synchronous>, transform_indices = @transform_1, window_bounds = array<i64: 16, 72>}, {pipeline_mode = #tpu.pipeline_mode<synchronous>, transform_indices = @transform_2, window_bounds = array<i64: 16, 1>}, {pipeline_mode = #tpu.pipeline_mode<synchronous>, transform_indices = @transform_3, window_bounds = array<i64: 32, 8>}, {pipeline_mode = #tpu.pipeline_mode<synchronous>, transform_indices = @transform_4, window_bounds = array<i64: 32, 1>}, {pipeline_mode = #tpu.pipeline_mode<synchronous>, transform_indices = @transform_5, window_bounds = array<i64: 16, 32>}, {pipeline_mode = #tpu.pipeline_mode<synchronous>, transform_indices = @transform_6, window_bounds = array<i64: 16, 1>}, {transform_indices = @transform_7, window_bounds = array<i64: 2, 8, 256>}]} {
    %c0 = arith.constant 0 : index
    %c0_0 = arith.constant 0 : index
    %0 = vector.load %arg2[%c0, %c0_0] : memref<16x72xbf16, #tpu.memory_space<vmem>>, vector<16x72xbf16>
    %c0_1 = arith.constant 0 : index
    %c0_2 = arith.constant 0 : index
    %1 = vector.load %arg1[%c0_1, %c0_2] : memref<72x512xbf16, #tpu.memory_space<vmem>>, vector<72x512xbf16>
    %cst = arith.constant dense<0.000000e+00> : vector<16x512xf32>
    %2 = tpu.matmul %0, %1, %cst {dimension_numbers = #tpu.dot_dimension_numbers<[1], [0], [0], [1], [0, 0, 1, 1], [], []>} : vector<16x72xbf16>, vector<72x512xbf16>, vector<16x512xf32> -> vector<16x512xf32>
    %c0_3 = arith.constant 0 : index
    %c0_4 = arith.constant 0 : index
    %3 = vector.load %arg3[%c0_3, %c0_4] : memref<16x1xf32, #tpu.memory_space<vmem>>, vector<16x1xf32>
    %4 = vector.broadcast %3 : vector<16x1xf32> to vector<16x512xf32>
    %5 = arith.addf %2, %4 : vector<16x512xf32>
    %cst_5 = arith.constant 0.000000e+00 : f32
    %6 = vector.broadcast %cst_5 : f32 to vector<16x512xf32>
    %7 = arith.maximumf %5, %6 : vector<16x512xf32>
    %8 = vector.extract_strided_slice %7 {offsets = [0, 0], sizes = [8, 512], strides = [1, 1]} : vector<16x512xf32> to vector<8x512xf32>
    %9 = vector.extract_strided_slice %7 {offsets = [8, 0], sizes = [8, 512], strides = [1, 1]} : vector<16x512xf32> to vector<8x512xf32>
    %10 = arith.addf %8, %9 : vector<8x512xf32>
    %11 = tpu.iota {dimensions = array<i32: 1>} : vector<8x2xi32>
    %cst_6 = arith.constant 0.000000e+00 : f32
    %12 = vector.broadcast %cst_6 : f32 to vector<8x2xf32>
    %13 = vector.extract_strided_slice %10 {offsets = [0, 0], sizes = [8, 256], strides = [1, 1]} : vector<8x512xf32> to vector<8x256xf32>
    %cst_7 = arith.constant dense<0.000000e+00> : vector<8xf32>
    %14 = vector.multi_reduction <add>, %13, %cst_7 [1] : vector<8x256xf32> to vector<8xf32>
    %15 = vector.shape_cast %14 : vector<8xf32> to vector<8x1xf32>
    %c0_i32 = arith.constant 0 : i32
    %16 = vector.broadcast %c0_i32 : i32 to vector<8x2xi32>
    %17 = arith.cmpi eq, %11, %16 : vector<8x2xi32>
    %18 = vector.shape_cast %15 : vector<8x1xf32> to vector<8x1xf32>
    %19 = vector.broadcast %18 : vector<8x1xf32> to vector<8x2xf32>
    %20 = arith.select %17, %19, %12 : vector<8x2xi1>, vector<8x2xf32>
    %21 = vector.extract_strided_slice %10 {offsets = [0, 256], sizes = [8, 256], strides = [1, 1]} : vector<8x512xf32> to vector<8x256xf32>
    %cst_8 = arith.constant dense<0.000000e+00> : vector<8xf32>
    %22 = vector.multi_reduction <add>, %21, %cst_8 [1] : vector<8x256xf32> to vector<8xf32>
    %23 = vector.shape_cast %22 : vector<8xf32> to vector<8x1xf32>
    %c1_i32 = arith.constant 1 : i32
    %24 = vector.broadcast %c1_i32 : i32 to vector<8x2xi32>
    %25 = arith.cmpi eq, %11, %24 : vector<8x2xi32>
    %26 = vector.shape_cast %23 : vector<8x1xf32> to vector<8x1xf32>
    %27 = vector.broadcast %26 : vector<8x1xf32> to vector<8x2xf32>
    %28 = arith.select %25, %27, %20 : vector<8x2xi1>, vector<8x2xf32>
    %cst_9 = arith.constant 3.906250e-03 : f32
    %29 = vector.broadcast %cst_9 : f32 to vector<8x2xf32>
    %30 = arith.mulf %28, %29 : vector<8x2xf32>
    %c0_10 = arith.constant 0 : index
    %c0_11 = arith.constant 0 : index
    %31 = vector.load %arg4[%c0_10, %c0_11] : memref<32x8xbf16, #tpu.memory_space<vmem>>, vector<32x8xbf16>
    %32 = arith.truncf %30 : vector<8x2xf32> to vector<8x2xbf16>
    %cst_12 = arith.constant dense<0.000000e+00> : vector<32x2xf32>
    %33 = tpu.matmul %31, %32, %cst_12 {dimension_numbers = #tpu.dot_dimension_numbers<[1], [0], [0], [1], [0, 0, 1, 1], [], []>} : vector<32x8xbf16>, vector<8x2xbf16>, vector<32x2xf32> -> vector<32x2xf32>
    %c0_13 = arith.constant 0 : index
    %c0_14 = arith.constant 0 : index
    %34 = vector.load %arg5[%c0_13, %c0_14] : memref<32x1xf32, #tpu.memory_space<vmem>>, vector<32x1xf32>
    %35 = vector.broadcast %34 : vector<32x1xf32> to vector<32x2xf32>
    %36 = arith.addf %33, %35 : vector<32x2xf32>
    %cst_15 = arith.constant 0.000000e+00 : f32
    %37 = vector.broadcast %cst_15 : f32 to vector<32x2xf32>
    %38 = arith.maximumf %36, %37 : vector<32x2xf32>
    %c0_16 = arith.constant 0 : index
    %c0_17 = arith.constant 0 : index
    %39 = vector.load %arg6[%c0_16, %c0_17] : memref<16x32xbf16, #tpu.memory_space<vmem>>, vector<16x32xbf16>
    %40 = arith.truncf %38 : vector<32x2xf32> to vector<32x2xbf16>
    %cst_18 = arith.constant dense<0.000000e+00> : vector<16x2xf32>
    %41 = tpu.matmul %39, %40, %cst_18 {dimension_numbers = #tpu.dot_dimension_numbers<[1], [0], [0], [1], [0, 0, 1, 1], [], []>} : vector<16x32xbf16>, vector<32x2xbf16>, vector<16x2xf32> -> vector<16x2xf32>
    %c0_19 = arith.constant 0 : index
    %c0_20 = arith.constant 0 : index
    %42 = vector.load %arg7[%c0_19, %c0_20] : memref<16x1xf32, #tpu.memory_space<vmem>>, vector<16x1xf32>
    %43 = vector.broadcast %42 : vector<16x1xf32> to vector<16x2xf32>
    %44 = arith.addf %41, %43 : vector<16x2xf32>
    %45 = vector.extract_strided_slice %44 {offsets = [0, 0], sizes = [8, 2], strides = [1, 1]} : vector<16x2xf32> to vector<8x2xf32>
    %46 = vector.extract_strided_slice %44 {offsets = [8, 0], sizes = [8, 2], strides = [1, 1]} : vector<16x2xf32> to vector<8x2xf32>
    %47 = arith.maximumf %45, %46 : vector<8x2xf32>
    %48 = arith.subf %45, %47 : vector<8x2xf32>
    %49 = math.exp %48 : vector<8x2xf32>
    %50 = arith.subf %46, %47 : vector<8x2xf32>
    %51 = math.exp %50 : vector<8x2xf32>
    %52 = arith.addf %49, %51 : vector<8x2xf32>
    %53 = tpu.reciprocal %52 {approx = true} : vector<8x2xf32> -> vector<8x2xf32>
    %54 = arith.mulf %49, %53 : vector<8x2xf32>
    %55 = arith.mulf %51, %53 : vector<8x2xf32>
    %56 = vector.extract_strided_slice %54 {offsets = [0, 0], sizes = [8, 1], strides = [1, 1]} : vector<8x2xf32> to vector<8x1xf32>
    %57 = vector.extract_strided_slice %7 {offsets = [0, 0], sizes = [8, 256], strides = [1, 1]} : vector<16x512xf32> to vector<8x256xf32>
    %58 = vector.broadcast %56 : vector<8x1xf32> to vector<8x256xf32>
    %59 = arith.mulf %58, %57 : vector<8x256xf32>
    %60 = vector.extract_strided_slice %55 {offsets = [0, 0], sizes = [8, 1], strides = [1, 1]} : vector<8x2xf32> to vector<8x1xf32>
    %61 = vector.extract_strided_slice %7 {offsets = [8, 0], sizes = [8, 256], strides = [1, 1]} : vector<16x512xf32> to vector<8x256xf32>
    %62 = vector.broadcast %60 : vector<8x1xf32> to vector<8x256xf32>
    %63 = arith.mulf %62, %61 : vector<8x256xf32>
    %64 = arith.addf %59, %63 : vector<8x256xf32>
    %c0_21 = arith.constant 0 : index
    %c0_22 = arith.constant 0 : index
    %c0_23 = arith.constant 0 : index
    %65 = vector.load %arg8[%c0_21, %c0_22, %c0_23] : memref<2x8x256xf32, #tpu.memory_space<vmem>>, vector<1x8x256xf32>
    %66 = vector.shape_cast %65 : vector<1x8x256xf32> to vector<8x256xf32>
    %67 = vector.shape_cast %64 : vector<8x256xf32> to vector<1x8x256xf32>
    tpu.vector_store %arg8[%c0_21, %c0_22, %c0_23], %67 {strides = array<i32>} : memref<2x8x256xf32, #tpu.memory_space<vmem>>, vector<1x8x256xf32>,
    %68 = vector.extract_strided_slice %54 {offsets = [0, 1], sizes = [8, 1], strides = [1, 1]} : vector<8x2xf32> to vector<8x1xf32>
    %69 = vector.extract_strided_slice %7 {offsets = [0, 256], sizes = [8, 256], strides = [1, 1]} : vector<16x512xf32> to vector<8x256xf32>
    %70 = vector.broadcast %68 : vector<8x1xf32> to vector<8x256xf32>
    %71 = arith.mulf %70, %69 : vector<8x256xf32>
    %72 = vector.extract_strided_slice %55 {offsets = [0, 1], sizes = [8, 1], strides = [1, 1]} : vector<8x2xf32> to vector<8x1xf32>
    %73 = vector.extract_strided_slice %7 {offsets = [8, 256], sizes = [8, 256], strides = [1, 1]} : vector<16x512xf32> to vector<8x256xf32>
    %74 = vector.broadcast %72 : vector<8x1xf32> to vector<8x256xf32>
    %75 = arith.mulf %74, %73 : vector<8x256xf32>
    %76 = arith.addf %71, %75 : vector<8x256xf32>
    %c1 = arith.constant 1 : index
    %c0_24 = arith.constant 0 : index
    %c0_25 = arith.constant 0 : index
    %77 = vector.load %arg8[%c1, %c0_24, %c0_25] : memref<2x8x256xf32, #tpu.memory_space<vmem>>, vector<1x8x256xf32>
    %78 = vector.shape_cast %77 : vector<1x8x256xf32> to vector<8x256xf32>
    %79 = vector.shape_cast %76 : vector<8x256xf32> to vector<1x8x256xf32>
    tpu.vector_store %arg8[%c1, %c0_24, %c0_25], %79 {strides = array<i32>} : memref<2x8x256xf32, #tpu.memory_space<vmem>>, vector<1x8x256xf32>,
    return
  }
  func.func @transform_0(%arg0: i32) -> (i32, i32) {
    %c0_i32 = arith.constant 0 : i32
    %c0_i32_0 = arith.constant 0 : i32
    return %c0_i32, %arg0 : i32, i32
  }
  func.func @transform_1(%arg0: i32) -> (i32, i32) {
    %c0_i32 = arith.constant 0 : i32
    %c0_i32_0 = arith.constant 0 : i32
    %c0_i32_1 = arith.constant 0 : i32
    return %c0_i32, %c0_i32_0 : i32, i32
  }
  func.func @transform_2(%arg0: i32) -> (i32, i32) {
    %c0_i32 = arith.constant 0 : i32
    %c0_i32_0 = arith.constant 0 : i32
    %c0_i32_1 = arith.constant 0 : i32
    return %c0_i32, %c0_i32_0 : i32, i32
  }
  func.func @transform_3(%arg0: i32) -> (i32, i32) {
    %c0_i32 = arith.constant 0 : i32
    %c0_i32_0 = arith.constant 0 : i32
    %c0_i32_1 = arith.constant 0 : i32
    return %c0_i32, %c0_i32_0 : i32, i32
  }
  func.func @transform_4(%arg0: i32) -> (i32, i32) {
    %c0_i32 = arith.constant 0 : i32
    %c0_i32_0 = arith.constant 0 : i32
    %c0_i32_1 = arith.constant 0 : i32
    return %c0_i32, %c0_i32_0 : i32, i32
  }
  func.func @transform_5(%arg0: i32) -> (i32, i32) {
    %c0_i32 = arith.constant 0 : i32
    %c0_i32_0 = arith.constant 0 : i32
    %c0_i32_1 = arith.constant 0 : i32
    return %c0_i32, %c0_i32_0 : i32, i32
  }
  func.func @transform_6(%arg0: i32) -> (i32, i32) {
    %c0_i32 = arith.constant 0 : i32
    %c0_i32_0 = arith.constant 0 : i32
    %c0_i32_1 = arith.constant 0 : i32
    return %c0_i32, %c0_i32_0 : i32, i32
  }
  func.func @transform_7(%arg0: i32) -> (i32, i32, i32) {
    %c0_i32 = arith.constant 0 : i32
    %c0_i32_0 = arith.constant 0 : i32
    %c0_i32_1 = arith.constant 0 : i32
    return %arg0, %c0_i32, %c0_i32_0 : i32, i32, i32
  }
}

</mosaic_0001>

<bundles_post_ra>
// kernel: split_att_conv2d.1
= control target key start
LH: loop header
LB: loop body
LE: loop exit
PB: predicated region body
PF: predicated region fallthrough
CT: control target
= control target key end

     0   :  { %s1079_s24 = smov 0   ;;  %s1081_s25 = smov 0   ;;  %s1271_s0 = inlined_call_operand.vmem [shape: bf16[72,1024], index: 0, kind: input, shape index: {}]   ;;  %s1272_s1 = inlined_call_operand.vmem [shape: bf16[16,72], index: 1, kind: input, shape index: {}]   ;;  %s1273_s2 = inlined_call_operand.vmem [shape: f32[16,1], index: 2, kind: input, shape index: {}]   ;;  %s1274_s3 = inlined_call_operand.vmem [shape: bf16[32,8], index: 3, kind: input, shape index: {}]   ;;  %s1275_s4 = inlined_call_operand.vmem [shape: f32[32,1], index: 4, kind: input, shape index: {}]   ;;  %s1276_s5 = inlined_call_operand.vmem [shape: bf16[16,32], index: 5, kind: input, shape index: {}]   ;;  %s1277_s6 = inlined_call_operand.vmem [shape: f32[16,1], index: 6, kind: input, shape index: {}]   ;;  %s1278_s7 = inlined_call_operand.vmem [shape: f32[4,8,256], index: 7, kind: output, shape index: {}]  }
   0x1   :  { %s1083_s26 = smov 0  }
   0x2 LB: > { %s871_s27 = sadd.s32 4294967295, %s1033_s26   ;;  %s1096_s28 = sadd.s32 1, %s1033_s26   ;;  %s1033_s26 = sphi %s1083_s26, %s1281_s26   ;;  %s1029_s25 = sphi %s1081_s25, %s1280_s25   ;;  %s1025_s24 = sphi %s1079_s24, %s1279_s24  }
   0x3   : > { %s21_s29 = ssub.s32 %s1033_s26, %s1096_s28  ;;  %s24_s30 = sadd.s32 1, %s1029_s25 }
   0x4   : > { %p22_p0 = scmp.eq.s32.totalorder %s21_s29, 0  ;;  %p31_p1 = scmp.ne.s32.totalorder %s1029_s25, %s1025_s24 }
   0x5   : > { %p32_p2 = scmp.eq.s32.totalorder %s1033_s26, 0  ;;  %p874_p4 = scmp.ge.s32.totalorder %s1033_s26, 2 }
   0x6   : > { %s1105_s8 = scalar_select %p22_p0, %s1029_s25, %s24_s30  }
   0x7   : > { %p33_p3 = por %p32_p2, %p31_p1  ;;  %227 = sbr.rel (%p874_p4) target bundleno = 25 (0x19), region = 40 }
   0xc   : > { %230 = sbr.rel (!%p33_p3) target bundleno = 25 (0x19), region = 44  ;;  %s232_s9 = sand.u32 (%p33_p3), 1, %s1029_s25  }
   0xd   : > { %s916_s10 = sshll.u32 (%p33_p3), %s1033_s26, 4  ;;  %s939_s11 = smul.u32 (%p33_p3), 144, %s232_s9 }
   0xe   : > { %s1113_s14 = scalar_lea.vmem (%p33_p3), %s1271_s0, %s916_s10 }
   0xf   : > { %v250_v0 = vld [vmem:[%s1113_s14] sm:$0xff] (%p33_p3)  ;;  %v252_v1 = vld [vmem:[%s1113_s14 + $0x8] sm:$0xff] (%p33_p3)  ;;  %s234_s15 = scalar_lea.vmem (%p33_p3), [#allocation2], %s939_s11 }
  0x10   : > { %v254_v2 = vld [vmem:[%s1113_s14 + $0x20] sm:$0xff] (%p33_p3)  ;;  %v256_v3 = vld [vmem:[%s1113_s14 + $0x28] sm:$0xff] (%p33_p3)  ;;  %251 = vst [vmem:[%s234_s15] sm:$0xff] (%p33_p3), %v250_v0  ;;  %253 = vst [vmem:[%s234_s15 + $0x8] sm:$0xff] (%p33_p3), %v252_v1 }
  0x11   : > { %v258_v4 = vld [vmem:[%s1113_s14 + $0x40] sm:$0xff]  ;;  %v260_v5 = vld [vmem:[%s1113_s14 + $0x48] sm:$0xff]  ;;  %255 = vst [vmem:[%s234_s15 + $0x10] sm:$0xff] %v254_v2  ;;  %257 = vst [vmem:[%s234_s15 + $0x18] sm:$0xff] %v256_v3 }
  0x12   : > { %259 = vst [vmem:[%s234_s15 + $0x20] sm:$0xff] %v258_v4  ;;  %261 = vst [vmem:[%s234_s15 + $0x28] sm:$0xff] %v260_v5  ;;  %v262_v6 = vld [vmem:[%s1113_s14 + $0x60] sm:$0xff]  ;;  %v264_v7 = vld [vmem:[%s1113_s14 + $0x68] sm:$0xff] }
  0x13   : > { %v266_v8 = vld [vmem:[%s1113_s14 + $0x80] sm:$0xff]  ;;  %263 = vst [vmem:[%s234_s15 + $0x30] sm:$0xff] %v262_v6  ;;  %265 = vst [vmem:[%s234_s15 + $0x38] sm:$0xff] %v264_v7  ;;  %v268_v9 = vld [vmem:[%s1113_s14 + $0x88] sm:$0xff] }
  0x14   : > { %267 = vst [vmem:[%s234_s15 + $0x40] sm:$0xff] %v266_v8  ;;  %v270_v10 = vld [vmem:[%s1113_s14 + $0xa0] sm:$0xff]  ;;  %v272_v11 = vld [vmem:[%s1113_s14 + $0xa8] sm:$0xff]  ;;  %269 = vst [vmem:[%s234_s15 + $0x48] sm:$0xff] %v268_v9 }
  0x15   : > { %271 = vst [vmem:[%s234_s15 + $0x50] sm:$0xff] %v270_v10  ;;  %273 = vst [vmem:[%s234_s15 + $0x58] sm:$0xff] %v272_v11  ;;  %v274_v12 = vld [vmem:[%s1113_s14 + $0xc0] sm:$0xff]  ;;  %v276_v13 = vld [vmem:[%s1113_s14 + $0xc8] sm:$0xff] }
  0x16   : > { %v278_v14 = vld [vmem:[%s1113_s14 + $0xe0] sm:$0xff]  ;;  %275 = vst [vmem:[%s234_s15 + $0x60] sm:$0xff] %v274_v12  ;;  %277 = vst [vmem:[%s234_s15 + $0x68] sm:$0xff] %v276_v13  ;;  %v280_v15 = vld [vmem:[%s1113_s14 + $0xe8] sm:$0xff] }
  0x17   : > { %279 = vst [vmem:[%s234_s15 + $0x70] sm:$0xff] %v278_v14  ;;  %v282_v16 = vld [vmem:[%s1113_s14 + $0x100] sm:$0xff]  ;;  %v284_v17 = vld [vmem:[%s1113_s14 + $0x108] sm:$0xff]  ;;  %281 = vst [vmem:[%s234_s15 + $0x78] sm:$0xff] %v280_v15 }
  0x18   : > { %283 = vst [vmem:[%s234_s15 + $0x80] sm:$0xff] %v282_v16  ;;  %285 = vst [vmem:[%s234_s15 + $0x88] sm:$0xff] %v284_v17 }
  0x19 PF: > { %p877_p5 = scmp.ge.s32.totalorder %s1033_s26, 1  ;;  %p290_p6 = scmp.lt.s32.totalorder %s1033_s26, 3 }
  0x1b   : > { %p291_p7 = pnand %p877_p5, %p290_p6 }
  0x1c   : > { %s297_s16 = sand.u32 (!%p291_p7), 1, %s1025_s24   ;;  %s878_s29 = sshll.u32 (!%p291_p7), %s871_s27, 1 }
  0x1d   : > { %294 = sbr.rel (%p291_p7) target bundleno = 998 (0x3e6), region = 67  ;;  %p331_p8 = scmp.lt.s32.totalorder (!%p291_p7), %s878_s29, 3 }
  0x1e   : > { %s940_s17 = smul.u32 (!%p291_p7), 144, %s297_s16 }
  0x20   : > { %s1139_s20 = scalar_lea.vmem (!%p291_p7), [#allocation2], %s940_s17 }
  0x22   : > { %v1035_v18 = vmov 0   ;;  %v358_v19 = vld [vmem:[%s1273_s2] sm:$0xff]  ;;  %vm469_vm0 = vcmask 1043456   ;;  %v357_v21 = vld [vmem:[%s1139_s20 + $0x88] sm:$0xff]  ;;  %v600_v35 = vld [vmem:[%s1275_s4 + $0x10] sm:$0xff]  ;;  %vm465_vm1 = vcmask 588800  }
  0x23   : > { %514 = vmatprep.mubr.bf16.mxu0 %v1035_v18  ;;  %557 = vmatprep.mubr.bf16.mxu1 %v1035_v18  ;;  %v356_v20 = vld [vmem:[%s1139_s20 + $0x80] sm:$0xff]  ;;  %v901_v23 = vcombine.high %v357_v21, %v357_v21  ;;  %v900_v25 = vcombine.low %v357_v21, %v357_v21  ;;  %v979_v27 = vld [vmem:[%s1139_s20 + $0x6c] ss:$16 sps:$4 sm:$0xff]   ;;  %v982_v32 = vld [vmem:[%s1139_s20 + $0x68] ss:$16 sps:$4 sm:$0xff]   ;;  %vm632_vm2 = vcmask 64512   ;;  %v580_v21 = vlaneseq }
  0x24   : > { %969 = vset.pattern.permute.xlu0 %v1035_v18  ;;  %970 = vset.pattern.permute.xlu1 %v1035_v18  ;;  %v899_v22 = vcombine.high %v356_v20, %v356_v20  ;;  %v898_v24 = vcombine.low %v356_v20, %v356_v20  ;;  %v977_v26 = vld [vmem:[%s1139_s20 + $0x64] ss:$16 sps:$4 sm:$0xff]   ;;  %v359_v28 = vld [vmem:[%s1273_s2 + $0x8] sm:$0xff]  ;;  %v981_v31 = vld [vmem:[%s1139_s20 + $0x60] ss:$16 sps:$4 sm:$0xff]   ;;  %vm1037_vm5 = vmmov 0  }
  0x25   : > { %362 = vperm.xlu0 %969, %v358_v19   ;;  %904 = vmatprep.subr.msk.bf16.mxu1 %vm469_vm0, %v901_v23  ;;  %v477_v30 = vsel %vm469_vm0, %v900_v25, 0  ;;  %v983_v33 = vld [vmem:[%s1139_s20 + $0x44] ss:$16 sps:$4 sm:$0xff]   ;;  %v985_v34 = vld [vmem:[%s1139_s20 + $0x4c] ss:$16 sps:$4 sm:$0xff]   ;;  %vm716_vm6 = vcmask 261120  }
  0x26   : > { %902 = vmatprep.subr.msk.bf16.mxu0 %vm469_vm0, %v899_v22  ;;  %v471_v29 = vsel %vm469_vm0, %v898_v24, 0  ;;  %532 = vmatpush1.bf16.msra.mxu1 %v477_v30  ;;  %v987_v36 = vld [vmem:[%s1139_s20 + $0x40] ss:$16 sps:$4 sm:$0xff]   ;;  %v988_v37 = vld [vmem:[%s1139_s20 + $0x48] ss:$16 sps:$4 sm:$0xff]   ;;  %v581_v22 = vand.u32 127, %v580_v21 }
  0x27   : > { %489 = vmatpush1.bf16.msra.mxu0 %v471_v29  ;;  %533 = vmatprep.subr.bf16.mxu1 %v979_v27  ;;  %v989_v38 = vld [vmem:[%s1139_s20 + $0x24] ss:$16 sps:$4 sm:$0xff]   ;;  %v991_v39 = vld [vmem:[%s1139_s20 + $0x2c] ss:$16 sps:$4 sm:$0xff]   ;;  %v993_v40 = vld [vmem:[%s1139_s20 + $0x20] ss:$16 sps:$4 sm:$0xff]  }
  0x28   : > { %490 = vmatprep.subr.bf16.mxu0 %v977_v26  ;;  %v598_v41 = vld [vmem:[%s1275_s4] sm:$0xff]  ;;  %v994_v42 = vld [vmem:[%s1139_s20 + $0x28] ss:$16 sps:$4 sm:$0xff]   ;;  %v997_v44 = vld [vmem:[%s1139_s20 + $0xc] ss:$16 sps:$4 sm:$0xff]   ;;  %vm585_vm3 = vcmp.eq.s32.totalorder %v581_v22, 0 }
  0x29   : > { %367 = vperm.xlu0 %969, %v359_v28   ;;  %v995_v43 = vld [vmem:[%s1139_s20 + $0x4] ss:$16 sps:$4 sm:$0xff]   ;;  %v599_v45 = vld [vmem:[%s1275_s4 + $0x8] sm:$0xff]  ;;  %v999_v46 = vld [vmem:[%s1139_s20] ss:$16 sps:$4 sm:$0xff]   ;;  %vm590_vm4 = vcmp.eq.s32.totalorder %v581_v22, 1 }
  0x2a   : > { %534 = vmatpush1.bf16.msra.mxu1 %v982_v32  ;;  %v1000_v47 = vld [vmem:[%s1139_s20 + $0x8] ss:$16 sps:$4 sm:$0xff]   ;;  %v1001_v48 = vld [vmem:[%s1272_s1] sm:$0xff]   ;;  %v1038_v22 = vmov 1   ;;  %s1283_s29 = smov (!%p331_p8, %s878_s29), 3 }
  0x2b   : > { %491 = vmatpush1.bf16.msra.mxu0 %v981_v31  ;;  %535 = vmatprep.subr.bf16.mxu1 %v985_v34  ;;  %v699_v49 = vld [vmem:[%s1277_s6] sm:$0xff]  ;;  %v700_v50 = vld [vmem:[%s1277_s6 + $0x8] sm:$0xff]  ;;  %v601_v20 = vld [vmem:[%s1275_s4 + $0x18] sm:$0xff]  ;;  %v1036_v31 = vmov 0.0   ;;  %s917_s30 = sshll.u32 %s1283_s29, 4 }
  0x2c   : > { %492 = vmatprep.subr.bf16.mxu0 %v983_v33  ;;  %v1002_v19 = vld [vmem:[%s1274_s3] sm:$0xff]   ;;  %v1003_v30 = vld [vmem:[%s1274_s3 + $0x8] sm:$0xff]   ;;  %s335_s27 = scalar_lea.vmem %s1278_s7, %s917_s30 }
  0x2d   : > { %614 = vperm.xlu0 %969, %v600_v35  }
  0x2e   : > { %536 = vmatpush1.bf16.msra.mxu1 %v988_v37 }
  0x2f   : > { %493 = vmatpush1.bf16.msra.mxu0 %v987_v36  ;;  %537 = vmatprep.subr.bf16.mxu1 %v991_v39 }
  0x30   : > { %494 = vmatprep.subr.bf16.mxu0 %v989_v38 }
  0x31   : > { %604 = vperm.xlu0 %969, %v598_v41  }
  0x32   : > { %538 = vmatpush1.bf16.msra.mxu1 %v994_v42 }
  0x33   : > { %495 = vmatpush1.bf16.msra.mxu0 %v993_v40  ;;  %539 = vmatprep.subr.bf16.mxu1 %v997_v44 }
  0x34   : > { %496 = vmatprep.subr.bf16.mxu0 %v995_v43 }
  0x35   : > { %609 = vperm.xlu0 %969, %v599_v45  }
  0x36   : > { %540 = vmatpush1.bf16.msra.mxu1 %v1000_v47 }
  0x37   : > { %497 = vmatpush1.bf16.msra.mxu0 %v999_v46  ;;  %930 = vmatprep.subr.bf16.mxu1 %v1036_v31 }
  0x39   : > { %703 = vperm.xlu0 %969, %v699_v49   ;;  %905 = vmatmul.mubr.msk.bf16.vlgmr.msra.gmra.mxu1 %vm465_vm1, %v1001_v48 }
  0x3a   : > { %903 = vmatmul.mubr.msk.bf16.vlgmr.msra.gmra.mxu0 %vm465_vm1, %v1001_v48  ;;  %934 = vmatprep.mubr.msk.bf16.mxu1 %vm1037_vm5, %v1036_v31 }
  0x3b   : > { %926 = vmatprep.mubr.msk.bf16.mxu0 %vm632_vm2, %v1002_v19 }
  0x3d   : > { %708 = vperm.xlu0 %969, %v700_v50   ;;  %v1004_v50 = vld [vmem:[%s1276_s5] sm:$0xff]  }
  0xa0   : > { %v363_v51 = vpop.permute.xlu0 %362 }
  0xa4   : > { %v368_v56 = vpop.permute.xlu0 %367 }
  0xa8   : > { %v615_v32 = vpop.permute.xlu0 %614 }
  0xac   : > { %v605_v33 = vpop.permute.xlu0 %604 }
  0xb0   : > { %v610_v40 = vpop.permute.xlu0 %609 }
  0xf9   : > { %v559_v53 = vpop.f32.mrf.mxu1 }
  0xfa   : > { %v516_v52 = vpop.f32.mrf.mxu0  ;;  %v1199_v5 = vadd.f32 %v559_v53, %v363_v51 }
  0xfb   : > { %v561_v55 = vpop.f32.mrf.mxu1  ;;  %v1184_v59 = vadd.f32 %v516_v52, %v363_v51 }
  0xfc   : > { %v518_v54 = vpop.f32.mrf.mxu0  ;;  %v1190_v62 = vadd.f32 %v561_v55, %v363_v51  ;;  %v570_v14 = vmax.f32 %v1199_v5, 0.0 }
  0xfd   : > { %v563_v58 = vpop.f32.mrf.mxu1  ;;  %v1186_v60 = vadd.f32 %v518_v54, %v363_v51  ;;  %v568_v6 = vmax.f32 %v1184_v59, 0.0  ;;  %v704_v51 = vpop.permute.xlu0 %703 }
  0xfe   : > { %v520_v57 = vpop.f32.mrf.mxu0  ;;  %v1193_v2 = vadd.f32 %v563_v58, %v368_v56  ;;  %v571_v10 = vmax.f32 %v1190_v62, 0.0 }
  0xff   : > { %v1188_v61 = vadd.f32 %v520_v57, %v368_v56  ;;  %v565_v0 = vpop.f32.mrf.mxu1  ;;  %v569_v7 = vmax.f32 %v1186_v60, 0.0 }
 0x100   : > { %v522_v63 = vpop.f32.mrf.mxu0  ;;  %v1197_v4 = vadd.f32 %v565_v0, %v368_v56  ;;  %v574_v11 = vmax.f32 %v1193_v2, 0.0 }
 0x101   : > { %v572_v1 = vmax.f32 %v1188_v61, 0.0  ;;  %v1195_v3 = vadd.f32 %v522_v63, %v368_v56  ;;  %v709_v54 = vpop.permute.xlu0 %708 }
 0x102   : > { %v575_v9 = vmax.f32 %v1197_v4, 0.0  ;;  %v578_v17 = vadd.f32 %v574_v11, %v570_v14 }
 0x103   : > { %v573_v8 = vmax.f32 %v1195_v3, 0.0  ;;  %v576_v12 = vadd.f32 %v572_v1, %v568_v6 }
 0x104   : > { %v579_v15 = vadd.f32 %v575_v9, %v571_v10 }
 0x105   : > { %v577_v13 = vadd.f32 %v573_v8, %v569_v7 }
 0x106   : > { %v587_v18 = vadd.f32 %v579_v15, %v578_v17 }
 0x107   : > { %v582_v16 = vadd.f32 %v577_v13, %v576_v12 }
 0x109   : > { %583 = vadd.xlane.f32.xlu1 %v582_v16 }
 0x10d   : > { %588 = vadd.xlane.f32.xlu1 %v587_v18 }
 0x11e   : > { %619 = vperm.xlu1 %970, %v601_v20  }
 0x192   : > { %v584_v23 = vpop.xlane.xlu1 %583 }
 0x193   : > { %v586_v24 = vsel %vm585_vm3, %v584_v23, 0.0 }
 0x196   : > { %v589_v25 = vpop.xlane.xlu1 %588 }
 0x197   : > { %v591_v26 = vsel %vm590_vm4, %v589_v25, %v586_v24 }
 0x198   : > { %v592_v27 = vmul.f32 0.00390625, %v591_v26 }
 0x19a   : > { %v597_v28 = vpack.c.bf16 %v592_v27, %v592_v27  ;;  %v620_v36 = vpop.permute.xlu1 %619 }
 0x19c   : > { %938 = vmatprep.subr.msk.bf16.mxu0 %vm469_vm0, %v597_v28  ;;  %v640_v29 = vsel %vm469_vm0, %v597_v28, 0 }
 0x19d   : > { %925 = vmatpush3.bf16.msra.mxu0 %v640_v29 }
 0x1a0   : > { %927 = vmatmul.mubr.msk.bf16.vlgmr.msra.gmra.mxu0 %vm632_vm2, %v1003_v30 }
 0x260   : > { %v928_v34 = vpop.f32.mrf.mxu0 }
 0x261   : > { %v685_v37 = vadd.f32 %v928_v34, %v615_v32 }
 0x262   : > { %v676_v35 = vpop.f32.mrf.mxu0 }
 0x263   : > { %v693_v42 = vmax.f32 %v685_v37, 0.0  ;;  %v677_v43 = vadd.f32 %v676_v35, %v605_v33 }
 0x264   : > { %v929_v38 = vpop.f32.mrf.mxu0 }
 0x265   : > { %v688_v39 = vadd.f32 %v929_v38, %v620_v36  ;;  %v691_v48 = vmax.f32 %v677_v43, 0.0 }
 0x266   : > { %v679_v41 = vpop.f32.mrf.mxu0 }
 0x267   : > { %v694_v44 = vmax.f32 %v688_v39, 0.0  ;;  %v680_v45 = vadd.f32 %v679_v41, %v610_v40 }
 0x269   : > { %v698_v46 = vpack.c.bf16 %v694_v44, %v693_v42  ;;  %v692_v47 = vmax.f32 %v680_v45, 0.0 }
 0x26b   : > { %931 = vmatpush3.bf16.msra.mxu1 %v698_v46  ;;  %v697_v49 = vpack.c.bf16 %v692_v47, %v691_v48 }
 0x26c   : > { %932 = vmatprep.subr.bf16.mxu1 %v1036_v31 }
 0x26f   : > { %933 = vmatpush3.bf16.msra.mxu1 %v697_v49 }
 0x272   : > { %935 = vmatmul.mubr.msk.bf16.vlgmr.msra.gmra.mxu1 %vm716_vm6, %v1004_v50 }
 0x332   : > { %v754_v52 = vpop.f32.mrf.mxu1 }
 0x333   : > { %v755_v56 = vadd.f32 %v754_v52, %v704_v51 }
 0x334   : > { %v936_v53 = vpop.f32.mrf.mxu1 }
 0x336   : > { %v757_v55 = vpop.f32.mrf.mxu1 }
 0x337   : > { %v758_v57 = vadd.f32 %v757_v55, %v709_v54 }
 0x338   : > { %v937_v58 = vpop.f32.mrf.mxu1 }
 0x339   : > { %v761_v63 = vmax.f32 %v755_v56, %v758_v57 }
 0x33b   : > { %v762_v0 = vsub.f32 %v755_v56, %v761_v63  ;;  %v765_v12 = vsub.f32 %v758_v57, %v761_v63 }
 0x33d   : > { %v763_v13 = vmul.f32 1.442695, %v762_v0  ;;  %v766_v15 = vmul.f32 1.442695, %v765_v12 }
 0x33f   : > { %1005 = vpow2.f32 %v763_v13 }
 0x340   : > { %1007 = vpow2.f32 %v766_v15 }
 0x34c   : > { %v1006_v16 = vpop.eup %1005 }
 0x34d   : > { %v1008_v17 = vpop.eup %1007 }
 0x34e   : > { %v768_v18 = vadd.f32 %v1008_v17, %v1006_v16 }
 0x350   : > { %1009 = vrcp.f32 %v768_v18 }
 0x35d   : > { %v1010_v19 = vpop.eup %1009 }
 0x35e   : > { %v771_v20 = vmul.f32 %v1010_v19, %v1008_v17  ;;  %v770_v21 = vmul.f32 %v1010_v19, %v1006_v16 }
 0x360   : > { %781 = vperm.xlu0 %969, %v771_v20   ;;  %774 = vperm.xlu1 %970, %v770_v21  }
 0x364   : > { %972 = vset.pattern.permute.xlu0 %v1038_v22  ;;  %971 = vset.pattern.permute.xlu1 %v1038_v22 }
 0x365   : > { %797 = vperm.xlu0 %972, %v771_v20   ;;  %791 = vperm.xlu1 %971, %v770_v21  }
 0x3db   : > { %v782_v23 = vpop.permute.xlu0 %781  ;;  %v775_v24 = vpop.permute.xlu1 %774 }
 0x3dc   : > { %v784_v25 = vmul.f32 %v782_v23, %v572_v1  ;;  %v785_v26 = vmul.f32 %v782_v23, %v573_v8  ;;  %v777_v27 = vmul.f32 %v775_v24, %v568_v6  ;;  %v778_v28 = vmul.f32 %v775_v24, %v569_v7 }
 0x3de   : > { %v786_v29 = vadd.f32 %v784_v25, %v777_v27  ;;  %v787_v30 = vadd.f32 %v785_v26, %v778_v28 }
 0x3e0   : > { %788 = vst [vmem:[%s335_s27] sm:$0xff] %v786_v29  ;;  %789 = vst [vmem:[%s335_s27 + $0x8] sm:$0xff] %v787_v30  ;;  %v798_v31 = vpop.permute.xlu0 %797  ;;  %v792_v61 = vpop.permute.xlu1 %791 }
 0x3e1   : > { %v800_v1 = vmul.f32 %v798_v31, %v574_v11  ;;  %v801_v59 = vmul.f32 %v798_v31, %v575_v9  ;;  %v794_v60 = vmul.f32 %v792_v61, %v570_v14  ;;  %v795_v3 = vmul.f32 %v792_v61, %v571_v10 }
 0x3e3   : > { %v802_v6 = vadd.f32 %v800_v1, %v794_v60  ;;  %v803_v7 = vadd.f32 %v801_v59, %v795_v3 }
 0x3e5   : > { %912 = vst [vmem:[%s335_s27 + $0x10] sm:$0xff] %v802_v6  ;;  %913 = vst [vmem:[%s335_s27 + $0x18] sm:$0xff] %v803_v7 }
 0x3e6 PF: > { %p14_p9 = scmp.ge.s32.totalorder %s1096_s28, 4   ;;  %s1279_s24 = smov %s1029_s25 }
 0x3e7   : > { %s1280_s25 = smov %s1105_s8  ;;  %s1281_s26 = smov %s1096_s28 }
 0x3e8   :  { %16 = sbr.rel (!%p14_p9) target bundleno = 2 (0x2), region = 107 }

</bundles_post_ra>
